<compile_context>
chip_gen: v6e
topology: v6e:2x2x1
jax: 0.10.0
libtpu: 0.0.40
codegen_flags: <defaults>
</compile_context>

<pallas_src>
import math
from functools import partial

import jax
import jax.numpy as jnp
from jax.experimental import pallas as pl
from jax.experimental.pallas import tpu as pltpu


def embedding_vmem_kernel(ids_ref, lut_ref, out_ref, *, tn, n, scale, unroll, guard):
    """Gather rows from a VMEM-resident table with dynamic vector loads.

    ids_ref : (n_pad,) int32 flattened token ids (SMEM, scalar-prefetched)
    lut_ref : (vocab, d_model) full embedding table (VMEM, resident across steps)
    out_ref : (tn, d_model) output tile (VMEM)
    """
    base = pl.program_id(0) * tn

    @pl.loop(0, tn // unroll)
    def _rows(g):
        for u in range(unroll):                       # statically unrolled inner loop
            r = g * unroll + u

            def write_row(r=r):
                row = ids_ref[base + r]               # SMEM scalar read
                vec = lut_ref[row, :].astype(jnp.float32) * scale
                out_ref[r, :] = vec.astype(out_ref.dtype)

            if guard:                                 # only emitted if padded rows exist
                pl.when(base + r < n)(write_row)
            else:
                write_row()


def embedding_hbm_gather_kernel(ids_ref, lut_hbm, out_ref, sems, *,
                                tn, gs, nsem, lookahead, scale):
    """Row gather from an HBM table, DMA'ing rows directly into the output tile.

    ids_ref : (n_pad,) int32 flattened token ids (SMEM, scalar-prefetched)
    lut_hbm : (vocab, d_model) embedding table left in HBM (memory_space=pl.ANY)
    out_ref : (tn, d_model) output tile (VMEM); rows land here via DMA
    sems    : (nsem,) DMA semaphores, one per in-flight row group
    """
    base = pl.program_id(0) * tn
    n_groups = tn // gs

    def issue_group(g):
        # Statically unrolled over the gs rows of group g: keeps the single
        # DMA-descriptor (misc) slot fed without per-row scalar loop overhead.
        for u in range(gs):
            r = g * gs + u
            row = ids_ref[base + r]
            pltpu.make_async_copy(lut_hbm.at[row], out_ref.at[r],
                                  sems.at[g % nsem]).start()

    def wait_group(g):
        # One wait per group: every issued row copy has identical size, so a
        # single gs-row descriptor accounts for exactly the bytes signalled on
        # this group's semaphore.
        pltpu.make_async_copy(lut_hbm.at[pl.ds(0, gs)],
                              out_ref.at[pl.ds(g * gs, gs)],
                              sems.at[g % nsem]).wait()

    # Prime: keep `lookahead` groups of row DMAs in flight.
    for g0 in range(min(lookahead, n_groups)):
        issue_group(g0)

    @pl.loop(0, n_groups)
    def _pipeline(g):
        wait_group(g)

        @pl.when(g + lookahead < n_groups)
        def _():
            issue_group(g + lookahead)

    # TODO(synk): cross-grid-step overlap (double-buffered row staging so the
    # next tile's gathers hide behind this tile's scale/writeback) is not
    # implemented; the in-step group lookahead already overlaps issue and waits.

    # embedding * sqrt(d_model); the whole (tn, d_model) tile stores lane-dense.
    out_ref[...] = (out_ref[...].astype(jnp.float32) * scale).astype(out_ref.dtype)


def _choose_row_tile(n, tn_request):
    """Multiple of 8, <= n, >= 2 grid steps when possible, prefer dividing n."""
    tn = max(8, min(tn_request, n))
    tn = (tn // 8) * 8
    if n >= 16 and (n + tn - 1) // tn < 2:      # give both v7x TensorCores a step
        tn = max(8, ((n // 2) // 8) * 8)
    t = tn
    while t > 8 and n % t != 0:
        t -= 8
    if n % t == 0 and 4 * t >= tn:              # accept a modestly smaller dividing tile
        tn = t
    return tn


def embeddings_forward(x, lut, *, tn=None, vmem_table_limit_bytes=12 * 1024 * 1024):
    """x: int (batch, seq) token ids; lut: (vocab, d_model). Returns (batch, seq, d_model)."""
    batch, seq = x.shape
    vocab, d_model = lut.shape
    n = batch * seq
    scale = float(math.sqrt(d_model))
    itemsize = jnp.dtype(lut.dtype).itemsize
    table_bytes = vocab * d_model * itemsize
    use_vmem_table = table_bytes <= vmem_table_limit_bytes

    tn = _choose_row_tile(n, tn if tn is not None else (256 if use_vmem_table else 1024))
    n_pad = ((n + tn - 1) // tn) * tn

    # ids on the scalar path (scalar prefetch -> SMEM); clamp so a bad id can
    # never become an out-of-bounds access / DMA.
    # TODO(synk): for very large batch*seq, feed ids as a per-step SMEM-blocked
    # input instead of prefetching the whole array (1-D SMEM pads to next_pow2).
    ids = jnp.clip(x.reshape(-1).astype(jnp.int32), 0, vocab - 1)
    if n_pad != n:
        ids = jnp.concatenate([ids, jnp.zeros((n_pad - n,), jnp.int32)])

    out_tile_bytes = tn * d_model * itemsize

    if use_vmem_table:
        vmem_limit = int(2 * table_bytes + 4 * out_tile_bytes + (2 << 20))
        out_flat = pl.pallas_call(
            partial(embedding_vmem_kernel, tn=tn, n=n, scale=scale,
                    unroll=8, guard=(n_pad != n)),
            out_shape=jax.ShapeDtypeStruct((n_pad, d_model), lut.dtype),
            grid_spec=pltpu.PrefetchScalarGridSpec(
                num_scalar_prefetch=1,                    # ids -> SMEM
                grid=(n_pad // tn,),
                in_specs=[
                    # Full table, constant block index -> resident across steps.
                    pl.BlockSpec((vocab, d_model), lambda i, ids: (0, 0)),
                ],
                out_specs=pl.BlockSpec((tn, d_model), lambda i, ids: (i, 0)),
            ),
            compiler_params=pltpu.CompilerParams(
                dimension_semantics=("parallel",),
                vmem_limit_bytes=max(vmem_limit, 16 << 20)),
        )(ids, lut)
    else:
        gs = 16 if tn % 16 == 0 else 8            # rows per DMA issue/wait group
        nsem = 8                                  # > lookahead -> no semaphore reuse in flight
        lookahead = max(1, min(4, tn // gs))
        vmem_limit = int(4 * out_tile_bytes + (2 << 20))
        out_flat = pl.pallas_call(
            partial(embedding_hbm_gather_kernel, tn=tn, gs=gs, nsem=nsem,
                    lookahead=lookahead, scale=scale),
            out_shape=jax.ShapeDtypeStruct((n_pad, d_model), lut.dtype),
            grid_spec=pltpu.PrefetchScalarGridSpec(
                num_scalar_prefetch=1,                    # ids -> SMEM
                grid=(n_pad // tn,),
                in_specs=[
                    pl.BlockSpec(memory_space=pl.ANY),    # table stays in HBM
                ],
                out_specs=pl.BlockSpec((tn, d_model), lambda i, ids: (i, 0)),
                scratch_shapes=[pltpu.SemaphoreType.DMA((nsem,))],
            ),
            compiler_params=pltpu.CompilerParams(
                dimension_semantics=("parallel",),
                vmem_limit_bytes=max(vmem_limit, 16 << 20)),
        )(ids, lut)

    if n_pad != n:
        out_flat = out_flat[:n]
    return out_flat.reshape(batch, seq, d_model)


if __name__ == "__main__":
    # Small, deterministic setup. d_model is a multiple of 128 (lane-dense stores)
    # and batch*seq = 512 gives a balanced 2-step grid.
    batch, seq = 4, 128
    vocab, d_model = 1000, 128

    key = jax.random.PRNGKey(0)
    k_lut, k_ids = jax.random.split(key)

    # nn.Embedding default init: weights ~ N(0, 1)
    lut = jax.random.normal(k_lut, (vocab, d_model), dtype=jnp.float32)
    x = jax.random.randint(k_ids, (batch, seq), 0, vocab, dtype=jnp.int32)

    # Pure-JAX reference: lut[x] * sqrt(d_model)
    ref = jnp.take(lut, x, axis=0) * math.sqrt(d_model)

    # Path 1: VMEM-resident table (what a 512 KB table should use).
    out_vmem = jax.block_until_ready(embeddings_forward(x, lut))
    assert out_vmem.shape == (batch, seq, d_model)
    assert jnp.allclose(out_vmem, ref, atol=1e-5, rtol=1e-5)

    # Path 2: force the HBM row-gather path (what a large vocab table would use).
    out_hbm = jax.block_until_ready(
        embeddings_forward(x, lut, vmem_table_limit_bytes=0))
    assert out_hbm.shape == (batch, seq, d_model)
    assert jnp.allclose(out_hbm, ref, atol=1e-5, rtol=1e-5)

    print("KERNEL_OK")
</pallas_src>

<mosaic_0001>
module attributes {stable_mosaic.version = 11 : i64} {
  func.func @embedding_vmem_kernel(%arg0: i32, %arg1: memref<512xi32, #tpu.memory_space<smem>>, %arg2: memref<1000x128xf32, #tpu.memory_space<vmem>>, %arg3: memref<256x128xf32, #tpu.memory_space<vmem>>) attributes {dimension_semantics = [#tpu.dimension_semantics<parallel>], iteration_bounds = array<i64: 2>, scalar_prefetch = 1 : i64, scratch_operands = 0 : i64, tpu.core_type = #tpu.core_type<tc>, window_params = [{pipeline_mode = #tpu.pipeline_mode<synchronous>, transform_indices = @transform_0, window_bounds = array<i64: 1000, 128>}, {transform_indices = @transform_1, window_bounds = array<i64: 256, 128>}]} {
    %c256_i32 = arith.constant 256 : i32
    %0 = arith.muli %arg0, %c256_i32 : i32
    %c0_i32 = arith.constant 0 : i32
    %c32_i32 = arith.constant 32 : i32
    %1 = arith.addi %c0_i32, %c32_i32 : i32
    %c1_i32 = arith.constant 1 : i32
    scf.for %arg4 = %c0_i32 to %1 step %c1_i32  : i32 {
      %c1_i32_1 = arith.constant 1 : i32
      %2 = arith.muli %arg4, %c1_i32_1 : i32
      %c0_i32_2 = arith.constant 0 : i32
      %3 = arith.addi %c0_i32_2, %2 : i32
      %c8_i32 = arith.constant 8 : i32
      %4 = arith.muli %3, %c8_i32 : i32
      %c0_i32_3 = arith.constant 0 : i32
      %5 = arith.addi %4, %c0_i32_3 : i32
      %6 = arith.addi %0, %5 : i32
      %7 = arith.index_cast %6 : i32 to index
      %8 = memref.load %arg1[%7] : memref<512xi32, #tpu.memory_space<smem>>
      %9 = arith.index_cast %8 : i32 to index
      %c0 = arith.constant 0 : index
      %10 = vector.load %arg2[%9, %c0] : memref<1000x128xf32, #tpu.memory_space<vmem>>, vector<1x128xf32>
      %11 = vector.shape_cast %10 : vector<1x128xf32> to vector<128xf32>
      %cst = arith.constant 11.3137083 : f32
      %12 = vector.broadcast %cst : f32 to vector<128xf32>
      %13 = arith.mulf %11, %12 : vector<128xf32>
      %14 = arith.index_cast %5 : i32 to index
      %c0_4 = arith.constant 0 : index
      %15 = vector.load %arg3[%14, %c0_4] : memref<256x128xf32, #tpu.memory_space<vmem>>, vector<1x128xf32>
      %16 = vector.shape_cast %15 : vector<1x128xf32> to vector<128xf32>
      %17 = vector.shape_cast %13 : vector<128xf32> to vector<1x128xf32>
      tpu.vector_store %arg3[%14, %c0_4], %17 {strides = array<i32>} : memref<256x128xf32, #tpu.memory_space<vmem>>, vector<1x128xf32>,
      %c8_i32_5 = arith.constant 8 : i32
      %18 = arith.muli %3, %c8_i32_5 : i32
      %c1_i32_6 = arith.constant 1 : i32
      %19 = arith.addi %18, %c1_i32_6 : i32
      %20 = arith.addi %0, %19 : i32
      %21 = arith.index_cast %20 : i32 to index
      %22 = memref.load %arg1[%21] : memref<512xi32, #tpu.memory_space<smem>>
      %23 = arith.index_cast %22 : i32 to index
      %c0_7 = arith.constant 0 : index
      %24 = vector.load %arg2[%23, %c0_7] : memref<1000x128xf32, #tpu.memory_space<vmem>>, vector<1x128xf32>
      %25 = vector.shape_cast %24 : vector<1x128xf32> to vector<128xf32>
      %cst_8 = arith.constant 11.3137083 : f32
      %26 = vector.broadcast %cst_8 : f32 to vector<128xf32>
      %27 = arith.mulf %25, %26 : vector<128xf32>
      %28 = arith.index_cast %19 : i32 to index
      %c0_9 = arith.constant 0 : index
      %29 = vector.load %arg3[%28, %c0_9] : memref<256x128xf32, #tpu.memory_space<vmem>>, vector<1x128xf32>
      %30 = vector.shape_cast %29 : vector<1x128xf32> to vector<128xf32>
      %31 = vector.shape_cast %27 : vector<128xf32> to vector<1x128xf32>
      tpu.vector_store %arg3[%28, %c0_9], %31 {strides = array<i32>} : memref<256x128xf32, #tpu.memory_space<vmem>>, vector<1x128xf32>,
      %c8_i32_10 = arith.constant 8 : i32
      %32 = arith.muli %3, %c8_i32_10 : i32
      %c2_i32 = arith.constant 2 : i32
      %33 = arith.addi %32, %c2_i32 : i32
      %34 = arith.addi %0, %33 : i32
      %35 = arith.index_cast %34 : i32 to index
      %36 = memref.load %arg1[%35] : memref<512xi32, #tpu.memory_space<smem>>
      %37 = arith.index_cast %36 : i32 to index
      %c0_11 = arith.constant 0 : index
      %38 = vector.load %arg2[%37, %c0_11] : memref<1000x128xf32, #tpu.memory_space<vmem>>, vector<1x128xf32>
      %39 = vector.shape_cast %38 : vector<1x128xf32> to vector<128xf32>
      %cst_12 = arith.constant 11.3137083 : f32
      %40 = vector.broadcast %cst_12 : f32 to vector<128xf32>
      %41 = arith.mulf %39, %40 : vector<128xf32>
      %42 = arith.index_cast %33 : i32 to index
      %c0_13 = arith.constant 0 : index
      %43 = vector.load %arg3[%42, %c0_13] : memref<256x128xf32, #tpu.memory_space<vmem>>, vector<1x128xf32>
      %44 = vector.shape_cast %43 : vector<1x128xf32> to vector<128xf32>
      %45 = vector.shape_cast %41 : vector<128xf32> to vector<1x128xf32>
      tpu.vector_store %arg3[%42, %c0_13], %45 {strides = array<i32>} : memref<256x128xf32, #tpu.memory_space<vmem>>, vector<1x128xf32>,
      %c8_i32_14 = arith.constant 8 : i32
      %46 = arith.muli %3, %c8_i32_14 : i32
      %c3_i32 = arith.constant 3 : i32
      %47 = arith.addi %46, %c3_i32 : i32
      %48 = arith.addi %0, %47 : i32
      %49 = arith.index_cast %48 : i32 to index
      %50 = memref.load %arg1[%49] : memref<512xi32, #tpu.memory_space<smem>>
      %51 = arith.index_cast %50 : i32 to index
      %c0_15 = arith.constant 0 : index
      %52 = vector.load %arg2[%51, %c0_15] : memref<1000x128xf32, #tpu.memory_space<vmem>>, vector<1x128xf32>
      %53 = vector.shape_cast %52 : vector<1x128xf32> to vector<128xf32>
      %cst_16 = arith.constant 11.3137083 : f32
      %54 = vector.broadcast %cst_16 : f32 to vector<128xf32>
      %55 = arith.mulf %53, %54 : vector<128xf32>
      %56 = arith.index_cast %47 : i32 to index
      %c0_17 = arith.constant 0 : index
      %57 = vector.load %arg3[%56, %c0_17] : memref<256x128xf32, #tpu.memory_space<vmem>>, vector<1x128xf32>
      %58 = vector.shape_cast %57 : vector<1x128xf32> to vector<128xf32>
      %59 = vector.shape_cast %55 : vector<128xf32> to vector<1x128xf32>
      tpu.vector_store %arg3[%56, %c0_17], %59 {strides = array<i32>} : memref<256x128xf32, #tpu.memory_space<vmem>>, vector<1x128xf32>,
      %c8_i32_18 = arith.constant 8 : i32
      %60 = arith.muli %3, %c8_i32_18 : i32
      %c4_i32 = arith.constant 4 : i32
      %61 = arith.addi %60, %c4_i32 : i32
      %62 = arith.addi %0, %61 : i32
      %63 = arith.index_cast %62 : i32 to index
      %64 = memref.load %arg1[%63] : memref<512xi32, #tpu.memory_space<smem>>
      %65 = arith.index_cast %64 : i32 to index
      %c0_19 = arith.constant 0 : index
      %66 = vector.load %arg2[%65, %c0_19] : memref<1000x128xf32, #tpu.memory_space<vmem>>, vector<1x128xf32>
      %67 = vector.shape_cast %66 : vector<1x128xf32> to vector<128xf32>
      %cst_20 = arith.constant 11.3137083 : f32
      %68 = vector.broadcast %cst_20 : f32 to vector<128xf32>
      %69 = arith.mulf %67, %68 : vector<128xf32>
      %70 = arith.index_cast %61 : i32 to index
      %c0_21 = arith.constant 0 : index
      %71 = vector.load %arg3[%70, %c0_21] : memref<256x128xf32, #tpu.memory_space<vmem>>, vector<1x128xf32>
      %72 = vector.shape_cast %71 : vector<1x128xf32> to vector<128xf32>
      %73 = vector.shape_cast %69 : vector<128xf32> to vector<1x128xf32>
      tpu.vector_store %arg3[%70, %c0_21], %73 {strides = array<i32>} : memref<256x128xf32, #tpu.memory_space<vmem>>, vector<1x128xf32>,
      %c8_i32_22 = arith.constant 8 : i32
      %74 = arith.muli %3, %c8_i32_22 : i32
      %c5_i32 = arith.constant 5 : i32
      %75 = arith.addi %74, %c5_i32 : i32
      %76 = arith.addi %0, %75 : i32
      %77 = arith.index_cast %76 : i32 to index
      %78 = memref.load %arg1[%77] : memref<512xi32, #tpu.memory_space<smem>>
      %79 = arith.index_cast %78 : i32 to index
      %c0_23 = arith.constant 0 : index
      %80 = vector.load %arg2[%79, %c0_23] : memref<1000x128xf32, #tpu.memory_space<vmem>>, vector<1x128xf32>
      %81 = vector.shape_cast %80 : vector<1x128xf32> to vector<128xf32>
      %cst_24 = arith.constant 11.3137083 : f32
      %82 = vector.broadcast %cst_24 : f32 to vector<128xf32>
      %83 = arith.mulf %81, %82 : vector<128xf32>
      %84 = arith.index_cast %75 : i32 to index
      %c0_25 = arith.constant 0 : index
      %85 = vector.load %arg3[%84, %c0_25] : memref<256x128xf32, #tpu.memory_space<vmem>>, vector<1x128xf32>
      %86 = vector.shape_cast %85 : vector<1x128xf32> to vector<128xf32>
      %87 = vector.shape_cast %83 : vector<128xf32> to vector<1x128xf32>
      tpu.vector_store %arg3[%84, %c0_25], %87 {strides = array<i32>} : memref<256x128xf32, #tpu.memory_space<vmem>>, vector<1x128xf32>,
      %c8_i32_26 = arith.constant 8 : i32
      %88 = arith.muli %3, %c8_i32_26 : i32
      %c6_i32 = arith.constant 6 : i32
      %89 = arith.addi %88, %c6_i32 : i32
      %90 = arith.addi %0, %89 : i32
      %91 = arith.index_cast %90 : i32 to index
      %92 = memref.load %arg1[%91] : memref<512xi32, #tpu.memory_space<smem>>
      %93 = arith.index_cast %92 : i32 to index
      %c0_27 = arith.constant 0 : index
      %94 = vector.load %arg2[%93, %c0_27] : memref<1000x128xf32, #tpu.memory_space<vmem>>, vector<1x128xf32>
      %95 = vector.shape_cast %94 : vector<1x128xf32> to vector<128xf32>
      %cst_28 = arith.constant 11.3137083 : f32
      %96 = vector.broadcast %cst_28 : f32 to vector<128xf32>
      %97 = arith.mulf %95, %96 : vector<128xf32>
      %98 = arith.index_cast %89 : i32 to index
      %c0_29 = arith.constant 0 : index
      %99 = vector.load %arg3[%98, %c0_29] : memref<256x128xf32, #tpu.memory_space<vmem>>, vector<1x128xf32>
      %100 = vector.shape_cast %99 : vector<1x128xf32> to vector<128xf32>
      %101 = vector.shape_cast %97 : vector<128xf32> to vector<1x128xf32>
      tpu.vector_store %arg3[%98, %c0_29], %101 {strides = array<i32>} : memref<256x128xf32, #tpu.memory_space<vmem>>, vector<1x128xf32>,
      %c8_i32_30 = arith.constant 8 : i32
      %102 = arith.muli %3, %c8_i32_30 : i32
      %c7_i32 = arith.constant 7 : i32
      %103 = arith.addi %102, %c7_i32 : i32
      %104 = arith.addi %0, %103 : i32
      %105 = arith.index_cast %104 : i32 to index
      %106 = memref.load %arg1[%105] : memref<512xi32, #tpu.memory_space<smem>>
      %107 = arith.index_cast %106 : i32 to index
      %c0_31 = arith.constant 0 : index
      %108 = vector.load %arg2[%107, %c0_31] : memref<1000x128xf32, #tpu.memory_space<vmem>>, vector<1x128xf32>
      %109 = vector.shape_cast %108 : vector<1x128xf32> to vector<128xf32>
      %cst_32 = arith.constant 11.3137083 : f32
      %110 = vector.broadcast %cst_32 : f32 to vector<128xf32>
      %111 = arith.mulf %109, %110 : vector<128xf32>
      %112 = arith.index_cast %103 : i32 to index
      %c0_33 = arith.constant 0 : index
      %113 = vector.load %arg3[%112, %c0_33] : memref<256x128xf32, #tpu.memory_space<vmem>>, vector<1x128xf32>
      %114 = vector.shape_cast %113 : vector<1x128xf32> to vector<128xf32>
      %115 = vector.shape_cast %111 : vector<128xf32> to vector<1x128xf32>
      tpu.vector_store %arg3[%112, %c0_33], %115 {strides = array<i32>} : memref<256x128xf32, #tpu.memory_space<vmem>>, vector<1x128xf32>,
    }
    %c32_i32_0 = arith.constant 32 : i32
    return
  }
  func.func @transform_0(%arg0: i32, %arg1: memref<512xi32, #tpu.memory_space<smem>>) -> (i32, i32) {
    %c0_i32 = arith.constant 0 : i32
    %c0_i32_0 = arith.constant 0 : i32
    %c0_i32_1 = arith.constant 0 : i32
    return %c0_i32, %c0_i32_0 : i32, i32
  }
  func.func @transform_1(%arg0: i32, %arg1: memref<512xi32, #tpu.memory_space<smem>>) -> (i32, i32) {
    %c0_i32 = arith.constant 0 : i32
    %c0_i32_0 = arith.constant 0 : i32
    return %arg0, %c0_i32 : i32, i32
  }
}

</mosaic_0001>

<bundles_post_ra>
// kernel: tpu_custom_call.1
= control target key start
LH: loop header
LB: loop body
LE: loop exit
PB: predicated region body
PF: predicated region fallthrough
CT: control target
= control target key end

     0   :  { %s500_s9 = smov [#allocation3]   ;;  %s692_s0 = inlined_call_operand.hbm [shape: s32[512], index: 0, kind: input, shape index: {}]   ;;  %s693_s1 = inlined_call_operand.hbm [shape: f32[1000,128], index: 1, kind: input, shape index: {}]   ;;  %s694_s2 = inlined_call_operand.hbm [shape: f32[512,128], index: 2, kind: output, shape index: {}]  }
   0x1   :  { %696 = sst [smem:[#allocation11_spill]] %s693_s1 }
   0x2   :  { %8 = dma.hbm_to_smem %s692_s0, 64, %s500_s9, [#allocation2] }
   0x3   :  { %470 = dma.done.wait [#allocation2], 64 }
   0x4   :  { %471 = vsyncadd [#allocation2], 4294967232 }
   0x5   :  { %10 = sfence }
   0x6   :  { %11 = vsyncpa [#allocation5], 0 }
   0x7   :  { %12 = vsyncpa [#allocation6], 0 }
   0x8   :  { %14 = vsyncpa [#allocation6 + $0x1], 0  ;;  %s525_s12 = smov 0   ;;  %s527_s13 = smov 0  }
   0x9   :  { %s529_s14 = smov 0   ;;  %s531_s15 = smov 0  }
   0xa LB: > { %s546_s0 = sadd.s32 4294967295, %s494_s15   ;;  %s299_s16 = sadd.s32 4294967294, %s494_s15   ;;  %s494_s15 = sphi %s531_s15, %s708_s15   ;;  %s490_s14 = sphi %s529_s14, %s707_s14   ;;  %s486_s13 = sphi %s527_s13, %s706_s13   ;;  %s482_s12 = sphi %s525_s12, %s705_s12  }
   0xb   : > { %s550_s17 = sadd.s32 1, %s494_s15   ;;  %s48_s18 = sadd.s32 1, %s490_s14 }
   0xc   : > { %s45_s19 = ssub.s32 %s494_s15, %s550_s17  ;;  %p58_p0 = scmp.ne.s32.totalorder %s490_s14, %s486_s13 }
   0xd   : > { %p46_p1 = scmp.eq.s32.totalorder %s45_s19, 0  ;;  %p59_p2 = scmp.eq.s32.totalorder %s546_s0, 1 }
   0xe   : > { %p64_p3 = scmp.ne.s32.totalorder %s486_s13, %s482_s12  ;;  %p65_p4 = scmp.eq.s32.totalorder %s299_s16, 1 }
   0xf   : > { %s561_s20 = scalar_select %p46_p1, %s490_s14, %s48_s18  }
  0x10   : > { %p563_p5 = por %p59_p2, %p58_p0  ;;  %p567_p6 = por %p65_p4, %p64_p3 }
  0x11   : > { %p300_p7 = scmp.ge.s32.totalorder %s494_s15, 1  ;;  %p72_p8 = scmp.lt.s32.totalorder %s494_s15, 3 }
  0x12   : > { %s698_s22 = scalar_select %p567_p6, 1, 0 }
  0x13   : > { %p341_p9 = scmp.eq.s32.totalorder %s546_s0, 0  ;;  %p574_p10 = pnand %p300_p7, %p72_p8 }
  0x14   : > { %s501_s24 = smov [#allocation4]  }
  0x15   : > { %s84_s25 = sshll.u32 %s501_s24, 4  ;;  %p333_p11 = pneg %p574_p10  ;;  %s85_s25 = int_to_ptr.vmem [resolvable:$true] %s84_s25 }
  0x16   : > { %s409_s26 = scalar_lea.vmem %s85_s25, 16000  ;;  %p417_p3 = scmp.lt.s32.totalorder %s85_s25, %s85_s25 }
  0x17   : > { %p334_p12 = pnand %p341_p9, %p333_p11  ;;  %p410_p0 = scmp.ne.s32.totalorder %s85_s25, %s409_s26 }
  0x18   : > { %p418_p4 = scmp.lt.s32.totalorder %s409_s26, %s409_s26 }
  0x19   : > { %p400_p13 = pneg %p334_p12 }
  0x1a   : > { %p419_p6 = por %p418_p4, %p417_p3 }
  0x1b   : > { %p412_p1 = pnand %p410_p0, %p400_p13 }
  0x1d   : > { %p413_p2 = pneg %p412_p1 }
  0x1f   : > { %p420_p7 = pnand %p419_p6, %p413_p2 }
  0x21   : > { %423 = shalt.err (!%p420_p7)
}
  0x22   : > { %s502_s27 = smov 128   ;;  %s503_s28 = smov 8  }
  0x23   : > { %s700_s1 = sld [smem:[#allocation11_spill]] }
  0x25   : > { %100 = sbr.rel (%p574_p10) target bundleno = 89 (0x59), region = 24 }
  0x29   : > { %336 = dma.hbm_to_vmem [thread:$0]  (!%p334_p12), %s700_s1, 16000, %s85_s25, [#allocation5], %s502_s27, %s502_s27, %s503_s28  }
  0x2a   : > { %473 = dma.done.wait (%p341_p9), [#allocation5], 16000  }
  0x2b   : > { %475 = vsyncadd (%p341_p9), [#allocation5], 4294951296  ;;  %s695_s3 = sand.u32 1, %s486_s13   ;;  %s593_s4 = sshll.u32 %s546_s0, 8 }
  0x2c   : > { %s597_s5 = sshll.u32 %s695_s3, 8  ;;  %s600_s7 = smov 0  }
  0x2d LB: >> { %s606_s8 = sshll.u32 %s498_s7, 3  ;;  %s701_s6 = scalar_lea.vmem [#allocation7], %s597_s5  ;;  %s498_s7 = sphi %s600_s7, %s122_s7  }
  0x2e   : >> { %s124_s9 = sadd.s32 %s606_s8, %s593_s4  ;;  %s613_s10 = scalar_lea.vmem %s701_s6, %s606_s8 [#allocation7] }
  0x2f   : >> { %s125_s11 = sld [smem:[#allocation3 + %s124_s9]]  ;;  %s131_s16 = sadd.s32 1, %s606_s8 }
  0x30   : >> { %s132_s18 = sadd.s32 %s593_s4, %s131_s16  ;;  %s139_s19 = sadd.s32 2, %s606_s8 }
  0x31   : >> { %s133_s23 = sld [smem:[#allocation3 + %s132_s18]]  ;;  %s140_s24 = sadd.s32 %s593_s4, %s139_s19 }
  0x32   : >> { %s141_s25 = sld [smem:[#allocation3 + %s140_s24]]  ;;  %s147_s26 = sadd.s32 3, %s606_s8 }
  0x33   : >> { %s148_s27 = sadd.s32 %s593_s4, %s147_s26  ;;  %s155_s28 = sadd.s32 4, %s606_s8 }
  0x34   : >> { %s149_s29 = sld [smem:[#allocation3 + %s148_s27]]  ;;  %s156_s30 = sadd.s32 %s593_s4, %s155_s28 }
  0x35   : >> { %s157_s3 = sld [smem:[#allocation3 + %s156_s30]]  ;;  %s126_s6 = scalar_lea.vmem [#allocation4], %s125_s11 }
  0x36   : >> { %v127_v0 = vld [vmem:[%s126_s6] sm:$0x1]  ;;  %s163_s9 = sadd.s32 5, %s606_s8  ;;  %s171_s1 = sadd.s32 6, %s606_s8 }
  0x37   : >> { %v128_v1 = vmul.f32 11.313708, %v127_v0  ;;  %s164_s16 = sadd.s32 %s593_s4, %s163_s9  ;;  %s134_s18 = scalar_lea.vmem [#allocation4], %s133_s23 }
  0x38   : >> { %v135_v2 = vld [vmem:[%s134_s18] sm:$0x1]  ;;  %s165_s19 = sld [smem:[#allocation3 + %s164_s16]]  ;;  %s142_s24 = scalar_lea.vmem [#allocation4], %s141_s25 }
  0x39   : >> { %130 = vst [vmem:[%s613_s10] sm:$0x1] %v128_v1  ;;  %v136_v3 = vmul.f32 11.313708, %v135_v2  ;;  %v143_v4 = vld [vmem:[%s142_s24] sm:$0x1]  ;;  %s172_s26 = sadd.s32 %s593_s4, %s171_s1  ;;  %s179_s27 = sadd.s32 7, %s606_s8 }
  0x3a   : >> { %v144_v5 = vmul.f32 11.313708, %v143_v4  ;;  %s173_s6 = sld [smem:[#allocation3 + %s172_s26]]  ;;  %s150_s11 = scalar_lea.vmem [#allocation4], %s149_s29 }
  0x3b   : >> { %308 = vst [vmem:[%s613_s10 + $0x1] sm:$0x1] %v136_v3  ;;  %v151_v6 = vld [vmem:[%s150_s11] sm:$0x1]  ;;  %s180_s28 = sadd.s32 %s593_s4, %s179_s27  ;;  %s158_s23 = scalar_lea.vmem [#allocation4], %s157_s3 }
  0x3c   : >> { %310 = vst [vmem:[%s613_s10 + $0x2] sm:$0x1] %v144_v5  ;;  %v152_v7 = vmul.f32 11.313708, %v151_v6  ;;  %v159_v8 = vld [vmem:[%s158_s23] sm:$0x1] }
  0x3d   : >> { %s181_s30 = sld [smem:[#allocation3 + %s180_s28]]  ;;  %v160_v9 = vmul.f32 11.313708, %v159_v8  ;;  %s122_s7 = sadd.s32 1, %s498_s7  }
  0x3e   : >> { %312 = vst [vmem:[%s613_s10 + $0x3] sm:$0x1] %v152_v7  ;;  %s166_s25 = scalar_lea.vmem [#allocation4], %s165_s19  ;;  %p119_p6 = scmp.ge.s32.totalorder %s122_s7, 32  }
  0x3f   : >> { %314 = vst [vmem:[%s613_s10 + $0x4] sm:$0x1] %v160_v9  ;;  %v167_v10 = vld [vmem:[%s166_s25] sm:$0x1]  ;;  %s326_s3 = sshll.u32 (%p119_p6), %s546_s0, 12  ;;  %s702_s18 = scalar_lea.vmem (%p119_p6), [#allocation7], %s597_s5 }
  0x40   : >> { %v168_v11 = vmul.f32 11.313708, %v167_v10  ;;  %s174_s1 = scalar_lea.vmem [#allocation4], %s173_s6  ;;  %s644_s16 = scalar_lea.hbm (%p119_p6), %s694_s2, %s326_s3 }
  0x41   : >> { %v175_v12 = vld [vmem:[%s174_s1] sm:$0x1]  ;;  %s201_s19 = sshll.u32 (%p119_p6), %s702_s18, 4  ;;  %s504_s0 = smov (%p119_p6), [#allocation7]   ;;  %s648_s19 = int_to_ptr.vmem [resolvable:$true] %s201_s19 }
  0x42   : >> { %316 = vst [vmem:[%s613_s10 + $0x5] sm:$0x1] %v168_v11  ;;  %v176_v13 = vmul.f32 11.313708, %v175_v12  ;;  %s424_s4 = scalar_lea.vmem (%p119_p6), %s648_s19, 4096  ;;  %s428_s24 = sshll.u32 (%p119_p6), %s504_s0, 4  ;;  %s429_s24 = int_to_ptr.vmem [resolvable:$false] %s428_s24 }
  0x43   : >> { %s182_s8 = scalar_lea.vmem [#allocation4], %s181_s30  ;;  %121 = sbr.rel (!%p119_p6) target bundleno = 45 (0x2d), region = 84 }
  0x44   : >> { %v183_v14 = vld [vmem:[%s182_s8] sm:$0x1]  ;;  %318 = vst [vmem:[%s613_s10 + $0x6] sm:$0x1] %v176_v13  ;;  %p425_p8 = scmp.ne.s32.totalorder (%p119_p6), %s648_s19, %s424_s4  ;;  %s430_s26 = scalar_lea.vmem (%p119_p6), %s429_s24, 8192 }
  0x45   : >> { %v184_v15 = vmul.f32 11.313708, %v183_v14  ;;  %p431_p11 = scmp.lt.s32.totalorder (%p119_p6), %s648_s19, %s429_s24  ;;  %p432_p12 = scmp.lt.s32.totalorder (%p119_p6), %s430_s26, %s424_s4 }
  0x46   : > { %p426_p9 = pnand (%p119_p6), %p425_p8, %p563_p5 }
  0x47   : >> { %320 = vst [vmem:[%s613_s10 + $0x7] sm:$0x1] %v184_v15  ;;  %s703_s10 = sand.u32 (%p119_p6), 1, %s486_s13   ;;  %p433_p13 = por (%p119_p6), %p432_p12, %p431_p11 }
  0x48   : > { %s652_s7 = scalar_lea.sflag [#allocation6], %s703_s10  ;;  %p427_p10 = pneg %p426_p9 }
  0x4a   : > { %p434_p0 = pnand %p433_p13, %p427_p10 }
  0x4c   : > { %437 = shalt.err (!%p434_p0)
}
  0x4d   : > { %s438_s5 = scalar_lea.hbm %s644_s16, 4096  ;;  %s442_s11 = scalar_lea.hbm %s694_s2, 8192 }
  0x4e   : > { %p439_p1 = scmp.ne.s32.totalorder %s644_s16, %s438_s5  ;;  %p443_p4 = scmp.lt.s32.totalorder %s644_s16, %s694_s2 }
  0x4f   : > { %p444_p7 = scmp.lt.s32.totalorder %s442_s11, %s438_s5 }
  0x50   : > { %p440_p2 = pnand %p439_p1, %p563_p5 }
  0x51   : > { %p445_p6 = por %p444_p7, %p443_p4 }
  0x52   : > { %p441_p3 = pneg %p440_p2 }
  0x54   : > { %p446_p8 = pnand %p445_p6, %p441_p3 }
  0x56   : > { %449 = shalt.err (!%p446_p8)
}
  0x57   : > { %s505_s30 = smov 128   ;;  %s506_s25 = smov 8  }
  0x58   : > { %331 = dma.vmem_to_hbm [thread:$0]  (%p563_p5), %s648_s19, 4096, %s644_s16, %s652_s7, %s505_s30, %s505_s30, %s506_s25  }
  0x59 PF: > { %p343_p9 = scmp.ge.s32.totalorder %s494_s15, 2  ;;  %s216_s1 = sand.u32 1, %s482_s12  }
  0x5a   : > { %p704_p10 = scmp.ne.s32.totalorder %s698_s22, 0  ;;  %s217_s8 = scalar_lea.sflag [#allocation6], %s216_s1 }
  0x5c   : > { %p338_p11 = pnand %p343_p9, %p704_p10 }
  0x5e   : > { %p339_p12 = pneg %p338_p11 }
  0x60   : > { %477 = dma.done.wait (%p339_p12), %s217_s8, 4096  }
  0x61   : > { %479 = vsyncadd (%p339_p12), %s217_s8, 4294963200  ;;  %p17_p13 = scmp.ge.s32.totalorder %s550_s17, 4   ;;  %s705_s12 = smov %s486_s13 }
  0x62   : > { %s706_s13 = smov %s490_s14  ;;  %s707_s14 = smov %s561_s20 }
  0x63   : > { %s708_s15 = smov %s550_s17  ;;  %19 = sbr.rel (!%p17_p13) target bundleno = 10 (0xa), region = 95 }
  0x68   :  { %222 = vsyncpa [#allocation5], 1 }
  0x69   :  { %224 = vsyncpa [#allocation5 + $0x1], 1 }
  0x6a   :  { %225 = vsyncpa [#allocation6], 1 }
  0x6b   :  { %227 = vsyncpa [#allocation6 + $0x1], 1 }

</bundles_post_ra>
